<compile_context>
chip_gen: v7x
topology: tpu7x:2x2x1
jax: 0.10.0
libtpu: 0.0.40
codegen_flags: <defaults>
</compile_context>

<pallas_src>
import jax
import jax.numpy as jnp
from jax.experimental import pallas as pl
from jax.experimental.pallas import tpu as pltpu


def _make_kernel(hw_total: int, hw_tile: int, ragged: bool):
    """Builds the kernel body with static spatial-extent parameters."""

    def kernel(x_ref, w1_ref, w2t_ref, o_ref, max_acc, sum_acc):
        hw_idx = pl.program_id(1)

        # ---- init running accumulators at the first spatial tile -----------
        @pl.when(hw_idx == 0)
        def _init():
            max_acc[...] = jnp.full(max_acc.shape, -jnp.inf, dtype=jnp.float32)
            sum_acc[...] = jnp.zeros(sum_acc.shape, dtype=jnp.float32)

        x = x_ref[0].astype(jnp.float32)                        # (C, hw_tile)

        if ragged:
            lane = jax.lax.broadcasted_iota(jnp.int32, x.shape, 1)
            valid = (hw_idx * hw_tile + lane) < hw_total
            x_max = jnp.where(valid, x, -jnp.inf)
            x_sum = jnp.where(valid, x, 0.0)
        else:
            x_max = x
            x_sum = x

        max_acc[...] = jnp.maximum(
            max_acc[...], jnp.max(x_max, axis=-1, keepdims=True))
        sum_acc[...] = sum_acc[...] + jnp.sum(x_sum, axis=-1, keepdims=True)

        # ---- finalize: fused SE MLP + sigmoid at the last spatial tile -----
        @pl.when(hw_idx == pl.num_programs(1) - 1)
        def _finalize():
            mx = max_acc[...]                                   # (C, 1)
            av = sum_acc[...] * (1.0 / hw_total)                # (C, 1)
            # Fuse both pooled vectors through the weights in one pass.
            pooled = jnp.concatenate([mx, av], axis=1)          # (C, 2)
            pooled_rows = pooled.T                              # (2, C)

            w1 = w1_ref[...].astype(jnp.float32)                # (C_r, C)
            w2t = w2t_ref[...].astype(jnp.float32)              # (C_r, C)

            # (2, C) x (C_r, C) contracted on C -> (2, C_r)
            h = jax.lax.dot_general(
                pooled_rows, w1,
                dimension_numbers=(((1,), (1,)), ((), ())),
                preferred_element_type=jnp.float32)
            h = jnp.maximum(h, 0.0)                             # ReLU
            # (2, C_r) @ (C_r, C) -> (2, C)
            y = jnp.dot(h, w2t, preferred_element_type=jnp.float32)

            out = jax.nn.sigmoid(y[0:1, :] + y[1:2, :])         # (1, C)
            o_ref[0] = out.astype(o_ref.dtype)

    return kernel


def channel_attention(x, w1, w2, *, hw_tile=None):
    """ChannelAttention forward.

    x : (B, C, H, W)   NCHW input, like PyTorch.
    w1: (C//r, C)      first 1x1 conv weight (bias-free), squeezed.
    w2: (C, C//r)      second 1x1 conv weight (bias-free), squeezed.
    returns (B, C, 1, 1) = sigmoid(se(maxpool(x)) + se(avgpool(x)))
    """
    B, C, H, W = x.shape
    HW = H * W
    C_r = w1.shape[0]
    assert w1.shape == (C_r, C) and w2.shape == (C, C_r)

    x_flat = x.reshape(B, C, HW)          # free reshape, stays NC(HW)
    w2t = jnp.transpose(w2)               # (C_r, C): lane-dense weight layout

    if hw_tile is None:
        # Keep each x block <= ~4 MiB so double buffering fits v5e's 16 MiB
        # default scoped VMEM and leaves headroom on v7x's 64 MiB physical.
        bytes_per = jnp.dtype(x.dtype).itemsize
        budget_elems = (4 * 1024 * 1024) // (bytes_per * C)
        cap = max(128, (budget_elems // 128) * 128)
        hw_tile = HW if HW <= cap else cap
    if hw_tile != HW:
        assert hw_tile % 128 == 0, "spatial tile must be lane-aligned"
    num_hw = pl.cdiv(HW, hw_tile)
    ragged = (HW % hw_tile) != 0

    kernel = _make_kernel(HW, hw_tile, ragged)

    out = pl.pallas_call(
        kernel,
        out_shape=jax.ShapeDtypeStruct((B, 1, C), x.dtype),
        grid_spec=pltpu.PrefetchScalarGridSpec(
            num_scalar_prefetch=0,
            grid=(B, num_hw),
            in_specs=[
                pl.BlockSpec((1, C, hw_tile), lambda b, hw: (b, 0, hw)),
                pl.BlockSpec((C_r, C), lambda b, hw: (0, 0)),
                pl.BlockSpec((C_r, C), lambda b, hw: (0, 0)),
            ],
            out_specs=pl.BlockSpec((1, 1, C), lambda b, hw: (b, 0, 0)),
            scratch_shapes=[
                pltpu.VMEM((C, 1), jnp.float32),   # running max
                pltpu.VMEM((C, 1), jnp.float32),   # running sum
            ],
        ),
        compiler_params=pltpu.CompilerParams(
            dimension_semantics=("parallel", "arbitrary"),
        ),
    )(x_flat, w1, w2t)

    return out.reshape(B, C, 1, 1)


def _reference(x, w1, w2):
    # Pure-JAX reference of the PyTorch forward.
    mx = jnp.max(x, axis=(2, 3))                        # (B, C)
    av = jnp.mean(x, axis=(2, 3))                       # (B, C)

    def se(v):                                          # v: (B, C)
        h = jnp.maximum(v @ w1.T, 0.0)                  # (B, C_r)
        return h @ w2.T                                 # (B, C)

    out = jax.nn.sigmoid(se(mx) + se(av))               # (B, C)
    return out[:, :, None, None]


if __name__ == "__main__":
    key = jax.random.PRNGKey(0)
    k_x, k_w1, k_w2, k_x2 = jax.random.split(key, 4)

    B, C, H, W = 2, 64, 16, 16
    reduction = 16
    C_r = C // reduction

    x = jax.random.normal(k_x, (B, C, H, W), dtype=jnp.float32)
    # Deterministic kaiming-ish init for the two bias-free 1x1 convs.
    w1 = jax.random.normal(k_w1, (C_r, C), dtype=jnp.float32) * (2.0 / C) ** 0.5
    w2 = jax.random.normal(k_w2, (C, C_r), dtype=jnp.float32) * (2.0 / C_r) ** 0.5

    out = jax.block_until_ready(channel_attention(x, w1, w2))
    ref = _reference(x, w1, w2)
    assert out.shape == (B, C, 1, 1)
    assert jnp.allclose(out, ref, atol=1e-5, rtol=1e-5)

    # Also exercise the tiled + ragged spatial-reduction path (HW=324, tile=128).
    x2 = jax.random.normal(k_x2, (B, C, 18, 18), dtype=jnp.float32)
    out2 = jax.block_until_ready(channel_attention(x2, w1, w2, hw_tile=128))
    ref2 = _reference(x2, w1, w2)
    assert out2.shape == (B, C, 1, 1)
    assert jnp.allclose(out2, ref2, atol=1e-5, rtol=1e-5)

    print("KERNEL_OK")
</pallas_src>

<mosaic_0001>
module attributes {stable_mosaic.version = 11 : i64} {
  func.func @kernel(%arg0: i32, %arg1: i32, %arg2: memref<1x64x256xf32, #tpu.memory_space<vmem>>, %arg3: memref<4x64xf32, #tpu.memory_space<vmem>>, %arg4: memref<4x64xf32, #tpu.memory_space<vmem>>, %arg5: memref<1x1x64xf32, #tpu.memory_space<vmem>>, %arg6: memref<64x1xf32, #tpu.memory_space<vmem>>, %arg7: memref<64x1xf32, #tpu.memory_space<vmem>>) attributes {dimension_semantics = [#tpu.dimension_semantics<parallel>, #tpu.dimension_semantics<arbitrary>], iteration_bounds = array<i64: 2, 1>, scalar_prefetch = 0 : i64, scratch_operands = 2 : i64, tpu.core_type = #tpu.core_type<tc>, window_params = [{transform_indices = @transform_0, window_bounds = array<i64: 1, 64, 256>}, {pipeline_mode = #tpu.pipeline_mode<synchronous>, transform_indices = @transform_1, window_bounds = array<i64: 4, 64>}, {pipeline_mode = #tpu.pipeline_mode<synchronous>, transform_indices = @transform_2, window_bounds = array<i64: 4, 64>}, {transform_indices = @transform_3, window_bounds = array<i64: 1, 1, 64>}]} {
    %c0_i32 = arith.constant 0 : i32
    %0 = arith.cmpi eq, %arg1, %c0_i32 : i32
    %1 = arith.extui %0 : i1 to i32
    %c0_i32_0 = arith.constant 0 : i32
    %2 = arith.cmpi ne, %1, %c0_i32_0 : i32
    scf.if %2 {
      %cst_14 = arith.constant 0xFF800000 : f32
      %18 = vector.broadcast %cst_14 : f32 to vector<64x1xf32>
      %c0_15 = arith.constant 0 : index
      %c0_16 = arith.constant 0 : index
      %19 = vector.load %arg6[%c0_15, %c0_16] : memref<64x1xf32, #tpu.memory_space<vmem>>, vector<64x1xf32>
      tpu.vector_store %arg6[%c0_15, %c0_16], %18 {strides = array<i32>} : memref<64x1xf32, #tpu.memory_space<vmem>>, vector<64x1xf32>,
      %cst_17 = arith.constant 0.000000e+00 : f32
      %20 = vector.broadcast %cst_17 : f32 to vector<64x1xf32>
      %c0_18 = arith.constant 0 : index
      %c0_19 = arith.constant 0 : index
      %21 = vector.load %arg7[%c0_18, %c0_19] : memref<64x1xf32, #tpu.memory_space<vmem>>, vector<64x1xf32>
      tpu.vector_store %arg7[%c0_18, %c0_19], %20 {strides = array<i32>} : memref<64x1xf32, #tpu.memory_space<vmem>>, vector<64x1xf32>,
    } else {
    }
    %c0 = arith.constant 0 : index
    %c0_1 = arith.constant 0 : index
    %c0_2 = arith.constant 0 : index
    %3 = vector.load %arg2[%c0, %c0_1, %c0_2] : memref<1x64x256xf32, #tpu.memory_space<vmem>>, vector<1x64x256xf32>
    %4 = vector.shape_cast %3 : vector<1x64x256xf32> to vector<64x256xf32>
    %c0_3 = arith.constant 0 : index
    %c0_4 = arith.constant 0 : index
    %5 = vector.load %arg6[%c0_3, %c0_4] : memref<64x1xf32, #tpu.memory_space<vmem>>, vector<64x1xf32>
    %cst = arith.constant dense<0xFF800000> : vector<64xf32>
    %6 = vector.multi_reduction <maximumf>, %4, %cst [1] : vector<64x256xf32> to vector<64xf32>
    %7 = vector.shape_cast %6 : vector<64xf32> to vector<64x1xf32>
    %8 = arith.maximumf %5, %7 : vector<64x1xf32>
    %c0_5 = arith.constant 0 : index
    %c0_6 = arith.constant 0 : index
    %9 = vector.load %arg6[%c0_5, %c0_6] : memref<64x1xf32, #tpu.memory_space<vmem>>, vector<64x1xf32>
    tpu.vector_store %arg6[%c0_5, %c0_6], %8 {strides = array<i32>} : memref<64x1xf32, #tpu.memory_space<vmem>>, vector<64x1xf32>,
    %c0_7 = arith.constant 0 : index
    %c0_8 = arith.constant 0 : index
    %10 = vector.load %arg7[%c0_7, %c0_8] : memref<64x1xf32, #tpu.memory_space<vmem>>, vector<64x1xf32>
    %cst_9 = arith.constant dense<0.000000e+00> : vector<64xf32>
    %11 = vector.multi_reduction <add>, %4, %cst_9 [1] : vector<64x256xf32> to vector<64xf32>
    %12 = vector.shape_cast %11 : vector<64xf32> to vector<64x1xf32>
    %13 = arith.addf %10, %12 : vector<64x1xf32>
    %c0_10 = arith.constant 0 : index
    %c0_11 = arith.constant 0 : index
    %14 = vector.load %arg7[%c0_10, %c0_11] : memref<64x1xf32, #tpu.memory_space<vmem>>, vector<64x1xf32>
    tpu.vector_store %arg7[%c0_10, %c0_11], %13 {strides = array<i32>} : memref<64x1xf32, #tpu.memory_space<vmem>>, vector<64x1xf32>,
    %c0_i32_12 = arith.constant 0 : i32
    %15 = arith.cmpi eq, %arg1, %c0_i32_12 : i32
    %16 = arith.extui %15 : i1 to i32
    %c0_i32_13 = arith.constant 0 : i32
    %17 = arith.cmpi ne, %16, %c0_i32_13 : i32
    scf.if %17 {
      %c0_14 = arith.constant 0 : index
      %c0_15 = arith.constant 0 : index
      %18 = vector.load %arg6[%c0_14, %c0_15] : memref<64x1xf32, #tpu.memory_space<vmem>>, vector<64x1xf32>
      %c0_16 = arith.constant 0 : index
      %c0_17 = arith.constant 0 : index
      %19 = vector.load %arg7[%c0_16, %c0_17] : memref<64x1xf32, #tpu.memory_space<vmem>>, vector<64x1xf32>
      %cst_18 = arith.constant 3.906250e-03 : f32
      %20 = vector.broadcast %cst_18 : f32 to vector<64x1xf32>
      %21 = arith.mulf %19, %20 : vector<64x1xf32>
      %22 = tpu.concatenate %18, %21 in 1 : vector<64x1xf32>, vector<64x1xf32> -> vector<64x2xf32>
      %23 = tpu.transpose %22, [1, 0] : vector<64x2xf32> -> vector<2x64xf32>
      %c0_19 = arith.constant 0 : index
      %c0_20 = arith.constant 0 : index
      %24 = vector.load %arg3[%c0_19, %c0_20] : memref<4x64xf32, #tpu.memory_space<vmem>>, vector<4x64xf32>
      %c0_21 = arith.constant 0 : index
      %c0_22 = arith.constant 0 : index
      %25 = vector.load %arg4[%c0_21, %c0_22] : memref<4x64xf32, #tpu.memory_space<vmem>>, vector<4x64xf32>
      %cst_23 = arith.constant dense<0.000000e+00> : vector<2x4xf32>
      %26 = tpu.matmul %23, %24, %cst_23 {dimension_numbers = #tpu.dot_dimension_numbers<[1], [1], [0], [0], [0, 0, 1, 0], [], []>} : vector<2x64xf32>, vector<4x64xf32>, vector<2x4xf32> -> vector<2x4xf32>
      %cst_24 = arith.constant 0.000000e+00 : f32
      %27 = vector.broadcast %cst_24 : f32 to vector<2x4xf32>
      %28 = arith.maximumf %26, %27 : vector<2x4xf32>
      %cst_25 = arith.constant dense<0.000000e+00> : vector<2x64xf32>
      %29 = tpu.matmul %28, %25, %cst_25 {dimension_numbers = #tpu.dot_dimension_numbers<[1], [0], [0], [1], [0, 0, 1, 1], [], []>} : vector<2x4xf32>, vector<4x64xf32>, vector<2x64xf32> -> vector<2x64xf32>
      %30 = vector.extract_strided_slice %29 {offsets = [0, 0], sizes = [1, 64], strides = [1, 1]} : vector<2x64xf32> to vector<1x64xf32>
      %31 = vector.extract_strided_slice %29 {offsets = [1, 0], sizes = [1, 64], strides = [1, 1]} : vector<2x64xf32> to vector<1x64xf32>
      %32 = arith.addf %30, %31 : vector<1x64xf32>
      %33 = arith.negf %32 : vector<1x64xf32>
      %34 = math.exp %33 : vector<1x64xf32>
      %cst_26 = arith.constant 1.000000e+00 : f32
      %35 = vector.broadcast %cst_26 : f32 to vector<1x64xf32>
      %36 = arith.addf %35, %34 : vector<1x64xf32>
      %37 = arith.divf %35, %36 : vector<1x64xf32>
      %c0_27 = arith.constant 0 : index
      %c0_28 = arith.constant 0 : index
      %c0_29 = arith.constant 0 : index
      %38 = vector.load %arg5[%c0_27, %c0_28, %c0_29] : memref<1x1x64xf32, #tpu.memory_space<vmem>>, vector<1x1x64xf32>
      %39 = vector.shape_cast %38 : vector<1x1x64xf32> to vector<1x64xf32>
      %40 = vector.shape_cast %37 : vector<1x64xf32> to vector<1x1x64xf32>
      tpu.vector_store %arg5[%c0_27, %c0_28, %c0_29], %40 {strides = array<i32>} : memref<1x1x64xf32, #tpu.memory_space<vmem>>, vector<1x1x64xf32>,
    } else {
    }
    return
  }
  func.func @transform_0(%arg0: i32, %arg1: i32) -> (i32, i32, i32) {
    %c0_i32 = arith.constant 0 : i32
    %c0_i32_0 = arith.constant 0 : i32
    return %arg0, %c0_i32, %arg1 : i32, i32, i32
  }
  func.func @transform_1(%arg0: i32, %arg1: i32) -> (i32, i32) {
    %c0_i32 = arith.constant 0 : i32
    %c0_i32_0 = arith.constant 0 : i32
    %c0_i32_1 = arith.constant 0 : i32
    return %c0_i32, %c0_i32_0 : i32, i32
  }
  func.func @transform_2(%arg0: i32, %arg1: i32) -> (i32, i32) {
    %c0_i32 = arith.constant 0 : i32
    %c0_i32_0 = arith.constant 0 : i32
    %c0_i32_1 = arith.constant 0 : i32
    return %c0_i32, %c0_i32_0 : i32, i32
  }
  func.func @transform_3(%arg0: i32, %arg1: i32) -> (i32, i32, i32) {
    %c0_i32 = arith.constant 0 : i32
    %c0_i32_0 = arith.constant 0 : i32
    %c0_i32_1 = arith.constant 0 : i32
    return %arg0, %c0_i32, %c0_i32_0 : i32, i32, i32
  }
}

</mosaic_0001>

<bundles_post_ra>
// kernel: tpu_custom_call.1
= control target key start
LH: loop header
LB: loop body
LE: loop exit
PB: predicated region body
PF: predicated region fallthrough
CT: control target
= control target key end

     0   :  { %8 = vsyncpa [#allocation5], 0  ;;  %s1316_s0 = inlined_call_operand.hbm [shape: f32[2,64,256], index: 0, kind: input, shape index: {}]   ;;  %s1317_s1 = inlined_call_operand.hbm [shape: f32[4,64], index: 1, kind: input, shape index: {}]   ;;  %s1318_s2 = inlined_call_operand.vmem [shape: f32[4,64], index: 2, kind: input, shape index: {}]   ;;  %s1319_s3 = inlined_call_operand.hbm [shape: f32[2,1,64], index: 3, kind: output, shape index: {}]  }
   0x1   :  { %10 = vsyncpa [#allocation5 + $0x1], 0 }
   0x2   :  { %11 = vsyncpa [#allocation8], 0 }
   0x3   :  { %12 = vsyncpa [#allocation6], 0 }
   0x4   :  { %14 = vsyncpa [#allocation6 + $0x1], 0  ;;  %s1013_s12 = smov 0   ;;  %s1015_s13 = smov 0  }
   0x5   :  { %s1017_s14 = smov 0   ;;  %s1019_s15 = smov 0  }
   0x6   :  { %s1021_s16 = smov 0   ;;  %s1023_s17 = smov 0  }
   0x7 LB: > { %s721_s18 = sadd.s32 4294967295, %s982_s17   ;;  %s722_s19 = sadd.s32 4294967294, %s982_s17   ;;  %s982_s17 = sphi %s1023_s17, %s20_s17   ;;  %s978_s16 = sphi %s1021_s16, %s1347_s16   ;;  %s974_s15 = sphi %s1019_s15, %s1346_s15   ;;  %s970_s14 = sphi %s1017_s14, %s1345_s14   ;;  %s966_s13 = sphi %s1015_s13, %s1344_s13   ;;  %s962_s12 = sphi %s1013_s12, %s1343_s12  }
   0x8   : > { %s41_s20 = sadd.s32 1, %s970_s14  ;;  %p48_p0 = scmp.ne.s32.totalorder %s970_s14, %s966_s13 }
   0x9   : > { %p49_p1 = scmp.eq.s32.totalorder %s982_s17, 0  ;;  %p54_p2 = scmp.ne.s32.totalorder %s966_s13, %s962_s12 }
   0xa   : > { %p1051_p3 = scmp.eq.s32.totalorder %s721_s18, 0  ;;  %p120_p4 = scmp.eq.s32.totalorder %s721_s18, 1 }
   0xb   : > { %p1055_p5 = por %p49_p1, %p48_p0  ;;  %p126_p6 = scmp.eq.s32.totalorder %s722_s19, 1 }
   0xc   : > { %s1326_s21 = scalar_select %p1051_p3, 1, 0 }
   0xd   : > { %p1061_p7 = por %p1051_p3, %p54_p2  ;;  %p1065_p8 = por %p120_p4, %p48_p0 }
   0xe   : > { %p1069_p9 = por %p126_p6, %p54_p2  ;;  %p723_p10 = scmp.ge.s32.totalorder %s982_s17, 1 }
   0xf   : > { %s1328_s23 = scalar_select %p1061_p7, 1, 0 }
  0x10   : > { %s1329_s24 = scalar_select %p1065_p8, 1, 0 }
  0x11   : > { %s1330_s25 = scalar_select %p1069_p9, 1, 0 }
  0x12   : > { %p133_p11 = scmp.lt.s32.totalorder %s982_s17, 3  ;;  %s984_s27 = smov [#allocation7]  }
  0x13   : > { %s146_s28 = sshll.u32 %s984_s27, 4  ;;  %p776_p1 = scmp.lt.s32.totalorder %s982_s17, 2  ;;  %s147_s28 = int_to_ptr.vmem [resolvable:$true] %s146_s28 }
  0x14   : > { %p1076_p13 = pnand %p723_p10, %p133_p11  ;;  %s32_s4 = sadd.s32 1, %s978_s16 }
  0x15   : > { %p1085_p4 = pnand %p776_p1, %p1055_p5  ;;  %p1096_p6 = scmp.ge.s32.totalorder %s32_s4, 2 }
  0x16   : > { %s1331_s26 = scalar_select %p1076_p13, 1, 0 }
  0x17   : > { %p763_p0 = pneg %p1076_p13  ;;  %s160_s6 = sand.u32 1, %s970_s14  }
  0x18   : > { %s1332_s29 = scalar_select %p1085_p4, 1, 0 }
  0x19   : > { %p1091_p2 = pnand %p763_p0, %p1051_p3  ;;  %s838_s9 = scalar_lea.hbm %s1317_s1, 64 }
  0x1a   : > { %s1334_s5 = scalar_select %p1096_p6, 1, 0 }
  0x1b   : > { %p839_p5 = scmp.ne.s32.totalorder %s1317_s1, %s838_s9  ;;  %p840_p10 = pneg %p1091_p2 }
  0x1c   : > { %p845_p0 = scmp.lt.u32.totalorder %s838_s9, %s1317_s1 }
  0x1d   : > { %p841_p11 = pnand %p840_p10, %p839_p5 }
  0x1f   : > { %p842_p1 = pneg %p841_p11 }
  0x21   : > { %p847_p12 = pnand %p845_p0, %p842_p1 }
  0x23   : > { %850 = shalt.err (!%p847_p12)
}
  0x24   : > { %s851_s22 = scalar_lea.vmem %s147_s28, 64  ;;  %p859_p7 = scmp.lt.s32.totalorder %s147_s28, %s147_s28 }
  0x25   : > { %p852_p9 = scmp.ne.s32.totalorder %s147_s28, %s851_s22  ;;  %p860_p13 = scmp.lt.s32.totalorder %s851_s22, %s851_s22 }
  0x27   : > { %p854_p8 = pnand %p852_p9, %p840_p10  ;;  %p861_p4 = por %p860_p13, %p859_p7 }
  0x29   : > { %p855_p3 = pneg %p854_p8 }
  0x2b   : > { %p862_p6 = pnand %p861_p4, %p855_p3 }
  0x2d   : > { %865 = shalt.err (!%p862_p6)
}
  0x2e   : > { %766 = dma.hbm_to_vmem [thread:$0]  (!%p1091_p2), %s1317_s1, 64, %s147_s28, [#allocation8]  }
  0x2f   : > { %p1335_p9 = scmp.ne.s32.totalorder %s1334_s5, 0  ;;  %s726_s8 = sshll.u32 %s160_s6, 7 }
  0x30   : > { %s740_s10 = sshll.u32 %s978_s16, 11  ;;  %s164_s19 = scalar_lea.vmem [#allocation4], %s726_s8 }
  0x31   : > { %s1349_s4 = smov (%p1335_p9, %s32_s4), 0  ;;  %s1127_s18 = scalar_lea.hbm %s1316_s0, %s740_s10 }
  0x32   : > { %s36_s9 = ssub.s32 %s978_s16, %s1349_s4  ;;  %s173_s22 = sshll.u32 %s164_s19, 4  ;;  %s1134_s22 = int_to_ptr.vmem [resolvable:$true] %s173_s22 }
  0x33   : > { %p39_p3 = scmp.eq.s32.totalorder %s36_s9, 0  ;;  %s1136_s5 = scalar_lea.sflag [#allocation5], %s160_s6 }
  0x34   : > { %s866_s27 = scalar_lea.hbm %s1127_s18, 2048  ;;  %p1336_p8 = scmp.ne.s32.totalorder %s1332_s29, 0 }
  0x35   : > { %s1132_s28 = scalar_select %p39_p3, %s970_s14, %s41_s20  }
  0x36   : > { %p867_p7 = scmp.ne.s32.totalorder %s1127_s18, %s866_s27  ;;  %p868_p12 = pneg %p1336_p8 }
  0x37   : > { %s871_s8 = scalar_lea.hbm %s1316_s0, 4096  ;;  %p872_p2 = scmp.lt.u32.totalorder %s1127_s18, %s1316_s0 }
  0x38   : > { %p869_p13 = pnand %p868_p12, %p867_p7  ;;  %p873_p6 = scmp.lt.u32.totalorder %s871_s8, %s866_s27 }
  0x39   : > { %p875_p10 = scmp.lt.u32.totalorder %s866_s27, %s1127_s18 }
  0x3a   : > { %p870_p4 = pneg %p869_p13  ;;  %p874_p5 = por %p873_p6, %p872_p2 }
  0x3c   : > { %p876_p11 = por %p875_p10, %p874_p5 }
  0x3e   : > { %p877_p1 = pnand %p876_p11, %p870_p4 }
  0x40   : > { %880 = shalt.err (!%p877_p1)
}
  0x41   : > { %s881_s20 = scalar_lea.vmem %s1134_s22, 2048  ;;  %s985_s6 = smov [#allocation4]  }
  0x42   : > { %p882_p0 = scmp.ne.s32.totalorder %s1134_s22, %s881_s20  ;;  %s886_s11 = sshll.u32 %s985_s6, 4  ;;  %s887_s11 = int_to_ptr.vmem [resolvable:$false] %s886_s11 }
  0x43   : > { %s888_s19 = scalar_lea.vmem %s887_s11, 4096  ;;  %p889_p7 = scmp.lt.s32.totalorder %s1134_s22, %s887_s11 }
  0x44   : > { %p884_p9 = pnand %p882_p0, %p868_p12  ;;  %p890_p13 = scmp.lt.s32.totalorder %s888_s19, %s881_s20 }
  0x46   : > { %p885_p3 = pneg %p884_p9  ;;  %p891_p2 = por %p890_p13, %p889_p7 }
  0x48   : > { %p892_p6 = pnand %p891_p2, %p885_p3 }
  0x4a   : > { %895 = shalt.err (!%p892_p6)
}
  0x4b   : > { %s986_s27 = smov 256   ;;  %s987_s7 = smov 16  }
  0x4c   : > { %770 = dma.hbm_to_vmem [thread:$0]  (!%p1336_p8), %s1127_s18, 2048, %s1134_s22, %s1136_s5, %s986_s27, %s986_s27, %s987_s7  }
  0x4d   : > { %p1337_p12 = scmp.ne.s32.totalorder %s1331_s26, 0 }
  0x4e   : > { %s1167_s9 = sand.u32 (!%p1337_p12), 1, %s966_s13   ;;  %p1338_p4 = scmp.ne.s32.totalorder (!%p1337_p12), %s1328_s23, 0 }
  0x4f   : > { %185 = sbr.rel (%p1337_p12) target bundleno = 962 (0x3c2), region = 32  ;;  %s730_s8 = sshll.u32 (!%p1337_p12), %s1167_s9, 7 }
  0x50   : > { %s188_s10 = scalar_lea.sflag (!%p1337_p12), [#allocation5], %s1167_s9  ;;  %s1171_s30 = scalar_lea.vmem (!%p1337_p12), [#allocation4], %s730_s8 }
  0x56   : > { %949 = dma.done.wait (%p1338_p4), %s188_s10, 2048  }
  0x57   : > { %951 = vsyncadd (%p1338_p4), %s188_s10, 4294965248  ;;  %p1339_p8 = scmp.ne.s32.totalorder %s1326_s21, 0 }
  0x59   : > { %953 = dma.done.wait (%p1339_p8), [#allocation8], 64  }
  0x5a   : > { %955 = vsyncadd (%p1339_p8), [#allocation8], 4294967232  ;;  %vm222_vm0 = vcmask 7168   ;;  %v988_v0 = vmov 0.0   ;;  %v239_v1 = vld [vmem:[%s1171_s30] sm:$0xff]  ;;  %v240_v2 = vld [vmem:[%s1171_s30 + $0x8] sm:$0xff] }
  0x5b   : > { %231 = vst.msk [vmem:[#allocation3] sm:$0xff] %vm222_vm0, %v988_v0  ;;  %232 = vst.msk [vmem:[#allocation3 + $0x8] sm:$0xff] %vm222_vm0, %v988_v0  ;;  %745 = vmatprep.subr.mxu0 %v988_v0  ;;  %750 = vmatprep.subr.mxu1 %v988_v0  ;;  %v241_v3 = vld [vmem:[%s1171_s30 + $0x10] sm:$0xff]  ;;  %v312_v4 = vadd.f32 %v240_v2, %v239_v1  ;;  %v242_v5 = vld [vmem:[%s1171_s30 + $0x18] sm:$0xff]  ;;  %v263_v25 = vmax.f32 %v239_v1, %v240_v2  ;;  %v989_v33 = vmov -inf   ;;  %s990_s21 = smov 1  }
  0x5c   : > { %233 = vst.msk [vmem:[#allocation3 + $0x10] sm:$0xff] %vm222_vm0, %v988_v0  ;;  %234 = vst.msk [vmem:[#allocation3 + $0x18] sm:$0xff] %vm222_vm0, %v988_v0  ;;  %v243_v6 = vld [vmem:[%s1171_s30 + $0x20] sm:$0xff]  ;;  %v244_v7 = vld [vmem:[%s1171_s30 + $0x28] sm:$0xff]  ;;  %v315_v10 = vadd.f32 %v242_v5, %v241_v3  ;;  %v266_v26 = vmax.f32 %v241_v3, %v242_v5  ;;  %vm453_vm1 = vcmask 523264   ;;  %vm991_vm2 = vmmov 0  }
  0x5d   : > { %235 = vst.msk [vmem:[#allocation3 + $0x20] sm:$0xff] %vm222_vm0, %v988_v0  ;;  %236 = vst.msk [vmem:[#allocation3 + $0x28] sm:$0xff] %vm222_vm0, %v988_v0  ;;  %v318_v8 = vadd.f32 %v244_v7, %v243_v6  ;;  %v245_v9 = vld [vmem:[%s1171_s30 + $0x30] sm:$0xff]  ;;  %313 = vadd.xlane.f32.xlu0 %v312_v4  ;;  %v246_v11 = vld [vmem:[%s1171_s30 + $0x38] sm:$0xff]  ;;  %v269_v27 = vmax.f32 %v243_v6, %v244_v7  ;;  %747 = vmatprep.mubr.msk.f32.mxu0 %vm991_vm2, %v988_v0  ;;  %vm535_vm3 = vcmask 1043456   ;;  %vm531_vm4 = vcmask 31744  }
  0x5e   : > { %237 = vst.msk [vmem:[#allocation3 + $0x30] sm:$0xff] %vm222_vm0, %v988_v0  ;;  %238 = vst.msk [vmem:[#allocation3 + $0x38] sm:$0xff] %vm222_vm0, %v988_v0  ;;  %v247_v12 = vld [vmem:[%s1171_s30 + $0x40] sm:$0xff]  ;;  %v248_v13 = vld [vmem:[%s1171_s30 + $0x48] sm:$0xff]  ;;  %v321_v14 = vadd.f32 %v246_v11, %v245_v9  ;;  %v272_v28 = vmax.f32 %v245_v9, %v246_v11  ;;  %752 = vmatprep.mubr.msk.f32.mxu1 %vm991_vm2, %v988_v0  ;;  %s737_s29 = sshll.u32 %s974_s15, 4  ;;  %s216_s18 = scalar_lea.vmem [#allocation9], %s1167_s9 }
  0x5f   : > { %319 = vadd.xlane.f32.xlu1 %v318_v8  ;;  %v249_v15 = vld [vmem:[%s1171_s30 + $0x50] sm:$0xff]  ;;  %v250_v16 = vld [vmem:[%s1171_s30 + $0x58] sm:$0xff]  ;;  %v324_v17 = vadd.f32 %v248_v13, %v247_v12  ;;  %v251_v18 = vld [vmem:[%s1171_s30 + $0x60] sm:$0xff]  ;;  %v275_v29 = vmax.f32 %v247_v12, %v248_v13  ;;  %223 = vst.msk [vmem:[#allocation2] sm:$0xff] %vm222_vm0, %v989_v33  ;;  %s634_s22 = sshll.u32 %s216_s18, 4  ;;  %vm619_vm5 = vcmask 516096   ;;  %s1267_s6 = scalar_lea.hbm %s1319_s3, %s737_s29  ;;  %s1269_s22 = int_to_ptr.vmem [resolvable:$true] %s634_s22 }
  0x60   : > { %v252_v19 = vld [vmem:[%s1171_s30 + $0x68] sm:$0xff]  ;;  %v327_v20 = vadd.f32 %v250_v16, %v249_v15  ;;  %v253_v21 = vld [vmem:[%s1171_s30 + $0x70] sm:$0xff]  ;;  %v254_v22 = vld [vmem:[%s1171_s30 + $0x78] sm:$0xff]  ;;  %v278_v30 = vmax.f32 %v249_v15, %v250_v16  ;;  %224 = vst.msk [vmem:[#allocation2 + $0x8] sm:$0xff] %vm222_vm0, %v989_v33  ;;  %s622_s11 = scalar_lea.sflag [#allocation6], %s1167_s9  ;;  %s896_s19 = scalar_lea.vmem %s1269_s22, 16 }
  0x61   : > { %316 = vadd.xlane.f32.xlu0 %v315_v10  ;;  %v330_v23 = vadd.f32 %v252_v19, %v251_v18  ;;  %v333_v24 = vadd.f32 %v254_v22, %v253_v21  ;;  %v281_v31 = vmax.f32 %v251_v18, %v252_v19  ;;  %v284_v32 = vmax.f32 %v253_v21, %v254_v22  ;;  %p897_p5 = scmp.ne.s32.totalorder %s1269_s22, %s896_s19  ;;  %p1340_p10 = scmp.ne.s32.totalorder %s1329_s24, 0 }
  0x62   : > { %225 = vst.msk [vmem:[#allocation2 + $0x10] sm:$0xff] %vm222_vm0, %v989_v33  ;;  %226 = vst.msk [vmem:[#allocation2 + $0x18] sm:$0xff] %vm222_vm0, %v989_v33  ;;  %v304_v34 = vld [vmem:[#allocation3] sm:$0xff]  ;;  %v305_v39 = vld [vmem:[#allocation3 + $0x8] sm:$0xff]  ;;  %s992_s15 = smov [#allocation9]  }
  0x63   : > { %322 = vadd.xlane.f32.xlu1 %v321_v14  ;;  %227 = vst.msk [vmem:[#allocation2 + $0x20] sm:$0xff] %vm222_vm0, %v989_v33  ;;  %228 = vst.msk [vmem:[#allocation2 + $0x28] sm:$0xff] %vm222_vm0, %v989_v33  ;;  %v306_v35 = vld [vmem:[#allocation3 + $0x10] sm:$0xff]  ;;  %v307_v41 = vld [vmem:[#allocation3 + $0x18] sm:$0xff]  ;;  %p898_p11 = pnand %p897_p5, %p1340_p10  ;;  %s900_s27 = sshll.u32 %s992_s15, 4  ;;  %s901_s27 = int_to_ptr.vmem [resolvable:$false] %s900_s27 }
  0x64   : > { %229 = vst.msk [vmem:[#allocation2 + $0x30] sm:$0xff] %vm222_vm0, %v989_v33  ;;  %230 = vst.msk [vmem:[#allocation2 + $0x38] sm:$0xff] %vm222_vm0, %v989_v33  ;;  %v308_v45 = vld [vmem:[#allocation3 + $0x20] sm:$0xff]  ;;  %v309_v47 = vld [vmem:[#allocation3 + $0x28] sm:$0xff]  ;;  %s902_s7 = scalar_lea.vmem %s901_s27, 32  ;;  %p903_p0 = scmp.lt.s32.totalorder %s1269_s22, %s901_s27 }
  0x65   : > { %325 = vadd.xlane.f32.xlu0 %v324_v17  ;;  %v310_v51 = vld [vmem:[#allocation3 + $0x30] sm:$0xff]  ;;  %v311_v55 = vld [vmem:[#allocation3 + $0x38] sm:$0xff]  ;;  %p899_p1 = pneg %p898_p11  ;;  %p904_p9 = scmp.lt.s32.totalorder %s902_s7, %s896_s19 }
  0x66   : > { %v255_v62 = vld [vmem:[#allocation2] sm:$0xff] }
  0x67   : > { %328 = vadd.xlane.f32.xlu1 %v327_v20  ;;  %v256_v1 = vld [vmem:[#allocation2 + $0x8] sm:$0xff]  ;;  %p905_p3 = por %p904_p9, %p903_p0 }
  0x69   : > { %331 = vadd.xlane.f32.xlu0 %v330_v23  ;;  %v257_v9 = vld [vmem:[#allocation2 + $0x10] sm:$0xff]  ;;  %v258_v11 = vld [vmem:[#allocation2 + $0x18] sm:$0xff]  ;;  %p906_p7 = pnand %p905_p3, %p899_p1 }
  0x6a   : > { %v259_v19 = vld [vmem:[#allocation2 + $0x20] sm:$0xff]  ;;  %v260_v21 = vld [vmem:[#allocation2 + $0x28] sm:$0xff] }
  0x6b   : > { %334 = vadd.xlane.f32.xlu1 %v333_v24 }
  0x6d   : > { %264 = vmax.xlane.f32.xlu0 %v263_v25 }
  0x6f   : > { %267 = vmax.xlane.f32.xlu1 %v266_v26 }
  0x71   : > { %270 = vmax.xlane.f32.xlu0 %v269_v27 }
  0x73   : > { %273 = vmax.xlane.f32.xlu1 %v272_v28  ;;  %v261_v28 = vld [vmem:[#allocation2 + $0x30] sm:$0xff] }
  0x75   : > { %276 = vmax.xlane.f32.xlu0 %v275_v29  ;;  %v262_v29 = vld [vmem:[#allocation2 + $0x38] sm:$0xff] }
  0x77   : > { %279 = vmax.xlane.f32.xlu1 %v278_v30 }
  0x79   : > { %282 = vmax.xlane.f32.xlu0 %v281_v31 }
  0x7b   : > { %285 = vmax.xlane.f32.xlu1 %v284_v32 }
  0xea   : > { %v314_v36 = vpop.xlane.xlu0 %313 }
  0xeb   : > { %v336_v37 = vadd.f32 %v314_v36, %v304_v34  ;;  %v451_v34 = vld [vmem:[#allocation7] sm:$0xf] }
  0xec   : > { %v320_v38 = vpop.xlane.xlu1 %319  ;;  %746 = vmatpush3.xpose.msk.msra.mxu0 %vm453_vm1, %v451_v34 }
  0xed   : > { %v338_v40 = vadd.f32 %v320_v38, %v306_v35  ;;  %344 = vst.msk [vmem:[#allocation3] sm:$0xff] %vm222_vm0, %v336_v37 }
  0xee   : > { %v317_v42 = vpop.xlane.xlu0 %316 }
  0xef   : > { %346 = vst.msk [vmem:[#allocation3 + $0x10] sm:$0xff] %vm222_vm0, %v338_v40  ;;  %v337_v43 = vadd.f32 %v317_v42, %v305_v39 }
  0xf0   : > { %v323_v44 = vpop.xlane.xlu1 %322 }
  0xf1   : > { %v339_v46 = vadd.f32 %v323_v44, %v307_v41  ;;  %345 = vst.msk [vmem:[#allocation3 + $0x8] sm:$0xff] %vm222_vm0, %v337_v43 }
  0xf2   : > { %v326_v48 = vpop.xlane.xlu0 %325 }
  0xf3   : > { %347 = vst.msk [vmem:[#allocation3 + $0x18] sm:$0xff] %vm222_vm0, %v339_v46  ;;  %v340_v49 = vadd.f32 %v326_v48, %v308_v45 }
  0xf4   : > { %v329_v50 = vpop.xlane.xlu1 %328  ;;  %v363_v52 = vld [vmem:[#allocation3] sm:$0xff] }
  0xf5   : > { %v341_v53 = vadd.f32 %v329_v50, %v309_v47  ;;  %348 = vst.msk [vmem:[#allocation3 + $0x20] sm:$0xff] %vm222_vm0, %v340_v49  ;;  %v371_v54 = vmul.f32 0.00390625, %v363_v52 }
  0xf6   : > { %v332_v56 = vpop.xlane.xlu0 %331  ;;  %v365_v61 = vld [vmem:[#allocation3 + $0x10] sm:$0xff] }
  0xf7   : > { %349 = vst.msk [vmem:[#allocation3 + $0x28] sm:$0xff] %vm222_vm0, %v341_v53  ;;  %v342_v57 = vadd.f32 %v332_v56, %v310_v51  ;;  %387 = vrot.lane.b32.xlu0 %v371_v54, %s990_s21  ;;  %v373_v3 = vmul.f32 0.00390625, %v365_v61 }
  0xf8   : > { %v335_v58 = vpop.xlane.xlu1 %334  ;;  %v364_v59 = vld [vmem:[#allocation3 + $0x8] sm:$0xff] }
  0xf9   : > { %v343_v60 = vadd.f32 %v335_v58, %v311_v55  ;;  %350 = vst.msk [vmem:[#allocation3 + $0x30] sm:$0xff] %vm222_vm0, %v342_v57  ;;  %v372_v63 = vmul.f32 0.00390625, %v364_v59 }
  0xfa   : > { %v265_v2 = vpop.xlane.xlu0 %264  ;;  %v366_v7 = vld [vmem:[#allocation3 + $0x18] sm:$0xff] }
  0xfb   : > { %351 = vst.msk [vmem:[#allocation3 + $0x38] sm:$0xff] %vm222_vm0, %v343_v60  ;;  %389 = vrot.lane.b32.xlu1 %v372_v63, %s990_s21  ;;  %v287_v4 = vmax.f32 %v255_v62, %v265_v2  ;;  %v374_v13 = vmul.f32 0.00390625, %v366_v7  ;;  %v452_v60 = vld [vmem:[%s1318_s2] sm:$0xf] }
  0xfc   : > { %v268_v5 = vpop.xlane.xlu1 %267  ;;  %v367_v6 = vld [vmem:[#allocation3 + $0x20] sm:$0xff]  ;;  %751 = vmatpush3.msk.msra.mxu1 %vm535_vm3, %v452_v60 }
  0xfd   : > { %v288_v8 = vmax.f32 %v256_v1, %v268_v5  ;;  %v375_v10 = vmul.f32 0.00390625, %v367_v6  ;;  %296 = vst.msk [vmem:[#allocation2] sm:$0xff] %vm222_vm0, %v287_v4 }
  0xfe   : > { %v271_v12 = vpop.xlane.xlu0 %270  ;;  %v368_v17 = vld [vmem:[#allocation3 + $0x28] sm:$0xff] }
  0xff   : > { %297 = vst.msk [vmem:[#allocation2 + $0x8] sm:$0xff] %vm222_vm0, %v288_v8  ;;  %391 = vrot.lane.b32.xlu1 %v373_v3, %s990_s21  ;;  %395 = vrot.lane.b32.xlu0 %v375_v10, %s990_s21  ;;  %v289_v14 = vmax.f32 %v257_v9, %v271_v12  ;;  %v376_v23 = vmul.f32 0.00390625, %v368_v17 }
 0x100   : > { %v274_v15 = vpop.xlane.xlu1 %273  ;;  %v369_v16 = vld [vmem:[#allocation3 + $0x30] sm:$0xff] }
 0x101   : > { %v290_v18 = vmax.f32 %v258_v11, %v274_v15  ;;  %v377_v20 = vmul.f32 0.00390625, %v369_v16  ;;  %298 = vst.msk [vmem:[#allocation2 + $0x10] sm:$0xff] %vm222_vm0, %v289_v14 }
 0x102   : > { %v277_v22 = vpop.xlane.xlu0 %276  ;;  %v370_v26 = vld [vmem:[#allocation3 + $0x38] sm:$0xff] }
 0x103   : > { %299 = vst.msk [vmem:[#allocation2 + $0x18] sm:$0xff] %vm222_vm0, %v290_v18  ;;  %393 = vrot.lane.b32.xlu1 %v374_v13, %s990_s21  ;;  %399 = vrot.lane.b32.xlu0 %v377_v20, %s990_s21  ;;  %v291_v24 = vmax.f32 %v259_v19, %v277_v22  ;;  %v378_v31 = vmul.f32 0.00390625, %v370_v26 }
 0x104   : > { %v280_v25 = vpop.xlane.xlu1 %279  ;;  %v355_v37 = vld [vmem:[#allocation2] sm:$0xff] }
 0x105   : > { %v292_v27 = vmax.f32 %v260_v21, %v280_v25  ;;  %300 = vst.msk [vmem:[#allocation2 + $0x20] sm:$0xff] %vm222_vm0, %v291_v24 }
 0x106   : > { %v283_v30 = vpop.xlane.xlu0 %282  ;;  %v356_v40 = vld [vmem:[#allocation2 + $0x8] sm:$0xff] }
 0x107   : > { %301 = vst.msk [vmem:[#allocation2 + $0x28] sm:$0xff] %vm222_vm0, %v292_v27  ;;  %397 = vrot.lane.b32.xlu1 %v376_v23, %s990_s21  ;;  %v293_v32 = vmax.f32 %v261_v28, %v283_v30 }
 0x108   : > { %v286_v33 = vpop.xlane.xlu1 %285  ;;  %v357_v43 = vld [vmem:[#allocation2 + $0x10] sm:$0xff] }
 0x109   : > { %v294_v35 = vmax.f32 %v262_v29, %v286_v33  ;;  %302 = vst.msk [vmem:[#allocation2 + $0x30] sm:$0xff] %vm222_vm0, %v293_v32 }
 0x10a   : > { %v358_v45 = vld [vmem:[#allocation2 + $0x18] sm:$0xff] }
 0x10b   : > { %303 = vst.msk [vmem:[#allocation2 + $0x38] sm:$0xff] %vm222_vm0, %v294_v35  ;;  %401 = vrot.lane.b32.xlu1 %v378_v31, %s990_s21 }
 0x10c   : > { %v359_v48 = vld [vmem:[#allocation2 + $0x20] sm:$0xff] }
 0x10e   : > { %v360_v51 = vld [vmem:[#allocation2 + $0x28] sm:$0xff] }
 0x110   : > { %v361_v54 = vld [vmem:[#allocation2 + $0x30] sm:$0xff] }
 0x112   : > { %v362_v57 = vld [vmem:[#allocation2 + $0x38] sm:$0xff] }
 0x169   : > { %v388_v36 = vpop.permute.xlu0 %387 }
 0x16a   : > { %v411_v38 = vsel %vm222_vm0, %v355_v37, %v388_v36 }
 0x16b   : > { %419 = vxpose.xlu0.b32.start [1/8] (short) (narrow) %v411_v38, 8 }
 0x16d   : > { %v390_v39 = vpop.permute.xlu1 %389 }
 0x16e   : > { %v412_v41 = vsel %vm222_vm0, %v356_v40, %v390_v39 }
 0x16f   : > { %420 = vxpose.xlu0.b32.cont [2/8] (short) (narrow) %v412_v41, 8 }
 0x171   : > { %v392_v42 = vpop.permute.xlu1 %391  ;;  %v396_v47 = vpop.permute.xlu0 %395 }
 0x172   : > { %v413_v44 = vsel %vm222_vm0, %v357_v43, %v392_v42  ;;  %v415_v49 = vsel %vm222_vm0, %v359_v48, %v396_v47 }
 0x173   : > { %421 = vxpose.xlu0.b32.cont [3/8] (short) (narrow) %v413_v44, 8 }
 0x175   : > { %v394_v0 = vpop.permute.xlu1 %393  ;;  %v400_v53 = vpop.permute.xlu0 %399 }
 0x176   : > { %v414_v46 = vsel %vm222_vm0, %v358_v45, %v394_v0  ;;  %v417_v55 = vsel %vm222_vm0, %v361_v54, %v400_v53 }
 0x177   : > { %422 = vxpose.xlu0.b32.cont [4/8] (short) (narrow) %v414_v46, 8 }
 0x179   : > { %v398_v50 = vpop.permute.xlu1 %397 }
 0x17a   : > { %v416_v52 = vsel %vm222_vm0, %v360_v51, %v398_v50 }
 0x17b   : > { %423 = vxpose.xlu0.b32.cont [5/8] (short) (narrow) %v415_v49, 8 }
 0x17d   : > { %v402_v56 = vpop.permute.xlu1 %401 }
 0x17e   : > { %v418_v58 = vsel %vm222_vm0, %v362_v57, %v402_v56 }
 0x17f   : > { %424 = vxpose.xlu0.b32.cont [6/8] (short) (narrow) %v416_v52, 8 }
 0x183   : > { %425 = vxpose.xlu0.b32.cont [7/8] (short) (narrow) %v417_v55, 8 }
 0x187   : > { %426 = vxpose.xlu0.b32.end [8/8] (short) (narrow) %v418_v58, 8 }
 0x1eb   : > { %v435_v59 = vpop.trf.xlu0 }
 0x1ec   : > { %748 = vmatmul.mubr.msk.f32.vlgmr.msra.gmra.mrb[0].mxu0 %vm453_vm1, %v435_v59 }
 0x2bf   : > { %v526_v61 = vpop.f32.mrb[0].mxu0 }
 0x2c0   : > { %v530_v62 = vmax.f32 %v526_v61, 0.0  ;;  %v749_v63 = vpop.f32.mrb[1].mxu0 }
 0x2c2   : > { %753 = vmatmul.mubr.msk.f32.vlgmr.msra.gmra.mrb[0].mxu1 %vm531_vm4, %v530_v62 }
 0x395   : > { %v605_v1 = vpop.f32.mrb[0].mxu1 }
 0x396   : > { %v610_v2 = vrot.slane %v605_v1, 1  ;;  %v754_v3 = vpop.f32.mrb[1].mxu1 }
 0x398   : > { %v612_v4 = vadd.f32 %v610_v2, %v605_v1 }
 0x39a   : > { %v736_v5 = vmul.f32 -1.442695, %v612_v4 }
 0x39c   : > { %834 = vpow2.f32 %v736_v5 }
 0x3a6   : > { %v835_v6 = vpop.eup %834 }
 0x3a7   : > { %v616_v7 = vadd.f32 1.0, %v835_v6 }
 0x3a9   : > { %836 = vrcp.f32 %v616_v7 }
 0x3b3   : > { %v837_v8 = vpop.eup %836 }
 0x3b4   : > { %620 = vst.msk [vmem:[%s216_s18] sm:$0x1] %vm619_vm5, %v837_v8 }
 0x3b5   : > { %909 = shalt.err (!%p906_p7)
}
 0x3b6   : > { %s910_s9 = scalar_lea.hbm %s1267_s6, 16  ;;  %s914_s30 = scalar_lea.hbm %s1319_s3, 32 }
 0x3b7   : > { %p911_p13 = scmp.ne.s32.totalorder %s1267_s6, %s910_s9  ;;  %p915_p12 = scmp.lt.u32.totalorder %s1267_s6, %s1319_s3 }
 0x3b8   : > { %p916_p4 = scmp.lt.u32.totalorder %s914_s30, %s910_s9  ;;  %p918_p5 = scmp.lt.u32.totalorder %s910_s9, %s1267_s6 }
 0x3b9   : > { %p912_p2 = pnand %p911_p13, %p1340_p10 }
 0x3ba   : > { %p917_p8 = por %p916_p4, %p915_p12 }
 0x3bb   : > { %p913_p6 = pneg %p912_p2 }
 0x3bc   : > { %p919_p11 = por %p918_p5, %p917_p8 }
 0x3be   : > { %p920_p1 = pnand %p919_p11, %p913_p6 }
 0x3c0   : > { %923 = shalt.err (!%p920_p1)
}
 0x3c1   : > { %761 = dma.vmem_to_hbm [thread:$0]  (%p1340_p10), %s1269_s22, 16, %s1267_s6, %s622_s11  }
 0x3c2 PF: > { %s646_s26 = sand.u32 1, %s962_s12   ;;  %p1341_p0 = scmp.ne.s32.totalorder %s1330_s25, 0 }
 0x3c3   : > { %p1342_p9 = scmp.ge.s32.totalorder %s982_s17, 2  ;;  %s647_s29 = scalar_lea.sflag [#allocation6], %s646_s26 }
 0x3c5   : > { %p772_p3 = pnand %p1342_p9, %p1341_p0 }
 0x3c7   : > { %957 = dma.done.wait (!%p772_p3), %s647_s29, 16  }
 0x3c8   : > { %959 = vsyncadd (!%p772_p3), %s647_s29, 4294967280  ;;  %s20_s17 = sadd.s32 1, %s982_s17   ;;  %s1343_s12 = smov %s966_s13 }
 0x3c9   : > { %p17_p7 = scmp.ge.s32.totalorder %s20_s17, 4   ;;  %s1344_s13 = smov %s970_s14 }
 0x3ca   : > { %s1345_s14 = smov %s1132_s28  ;;  %s1346_s15 = smov %s978_s16 }
 0x3cb   : > { %s1347_s16 = smov %s1349_s4  ;;  %19 = sbr.rel (!%p17_p7) target bundleno = 7 (0x7), region = 89 }
 0x3d2   :  { %651 = vsyncpa [#allocation5], 1 }
 0x3d3   :  { %653 = vsyncpa [#allocation5 + $0x1], 1 }
 0x3d4   :  { %654 = vsyncpa [#allocation8], 1 }
 0x3d5   :  { %655 = vsyncpa [#allocation6], 1 }
 0x3d6   :  { %657 = vsyncpa [#allocation6 + $0x1], 1 }

</bundles_post_ra>
